<compile_context>
chip_gen: v7x
topology: tpu7x:2x2x1
jax: 0.10.0
libtpu: 0.0.40
codegen_flags: <defaults>
</compile_context>

<pallas_src>
import jax
import jax.numpy as jnp
from jax.experimental import pallas as pl
from jax.experimental.pallas import tpu as pltpu


def _round_up(n, m):
    return ((n + m - 1) // m) * m


def mrnn_seq_kernel(x_ref, h0_ref, wx_ref, wgh_ref, b_ref, y_ref, h_ref):
    """One grid step == one timestep. h_ref is the VMEM-resident hidden state."""
    @pl.when(pl.program_id(0) == 0)
    def _():
        h_ref[...] = h0_ref[...]

    x = x_ref[...]            # (B, I)
    h = h_ref[...]            # (B, HP)
    hp = h_ref.shape[-1]

    # Fused x-matmul: columns [0:HP) -> update pre-act, [HP:2HP) -> gate pre-act.
    z = jnp.dot(x, wx_ref[...], preferred_element_type=jnp.float32) + b_ref[...]

    update = jnp.tanh(z[:, :hp])
    g = jax.nn.sigmoid(
        z[:, hp:] + jnp.dot(h, wgh_ref[...], preferred_element_type=jnp.float32))

    h_new = h + g * (update - h)          # == (1-g)*h + g*update
    h_ref[...] = h_new
    y_ref[...] = h_new.astype(y_ref.dtype)


def make_params(key, input_size, hidden_size):
    """Deterministic xavier-uniform weights + small random biases (module shapes)."""
    def xavier(k, fan_in, fan_out):
        bound = (6.0 / (fan_in + fan_out)) ** 0.5
        # stored as (in, out) so the kernel computes x @ W (== PyTorch x @ W.T)
        return jax.random.uniform(k, (fan_in, fan_out), jnp.float32, -bound, bound)

    k1, k2, k3, k4 = jax.random.split(key, 4)
    cat = input_size + hidden_size
    w_g = xavier(k2, cat, hidden_size)          # Linear_(input+hidden -> hidden)
    return {
        "W_hx": xavier(k1, input_size, hidden_size),   # Linear_(input -> hidden)
        "b_hx": 0.1 * jax.random.normal(k3, (hidden_size,), jnp.float32),
        "W_g_x": w_g[:input_size, :],                  # split of the concat weight
        "W_g_h": w_g[input_size:, :],
        "b_g": 0.1 * jax.random.normal(k4, (hidden_size,), jnp.float32),
    }


def _pack_params(params, input_size, hidden_size, hp):
    """Pack/pad weights into lane-dense fused layouts (pure wrapper-side precompute)."""
    I, H = input_size, hidden_size
    wx = jnp.zeros((I, 2 * hp), jnp.float32)
    wx = wx.at[:, :H].set(params["W_hx"])          # update half
    wx = wx.at[:, hp:hp + H].set(params["W_g_x"])  # gate half (x part)

    wgh = jnp.zeros((hp, hp), jnp.float32)
    wgh = wgh.at[:H, :H].set(params["W_g_h"])      # gate half (h part)

    b = jnp.zeros((1, 2 * hp), jnp.float32)
    b = b.at[0, :H].set(params["b_hx"])
    b = b.at[0, hp:hp + H].set(params["b_g"])
    return wx, wgh, b


def minimal_rnn_forward(params, xs, h0):
    """Run MinimalRNNCell over a sequence in one kernel.

    xs: (SEQ, B, input_size), h0: (B, hidden_size).
    Returns (ys, h_last) with ys: (SEQ, B, hidden_size).
    """
    seq, batch, input_size = xs.shape
    hidden_size = h0.shape[-1]
    hp = _round_up(max(hidden_size, 128), 128)     # lane-dense internal width

    wx_cat, wgh, b_cat = _pack_params(params, input_size, hidden_size, hp)
    h0_p = jnp.zeros((batch, hp), jnp.float32).at[:, :hidden_size].set(h0)

    ys_padded = pl.pallas_call(
        mrnn_seq_kernel,
        out_shape=jax.ShapeDtypeStruct((seq, batch, hp), jnp.float32),
        grid=(seq,),
        in_specs=[
            pl.BlockSpec((None, batch, input_size), lambda s: (s, 0, 0)),  # x_t
            pl.BlockSpec((batch, hp), lambda s: (0, 0)),                   # h0 (resident)
            pl.BlockSpec((input_size, 2 * hp), lambda s: (0, 0)),          # fused x-weight
            pl.BlockSpec((hp, hp), lambda s: (0, 0)),                      # gate h-weight
            pl.BlockSpec((1, 2 * hp), lambda s: (0, 0)),                   # fused bias
        ],
        out_specs=pl.BlockSpec((None, batch, hp), lambda s: (s, 0, 0)),
        scratch_shapes=[pltpu.VMEM((batch, hp), jnp.float32)],             # carried h
        compiler_params=pltpu.CompilerParams(
            dimension_semantics=("arbitrary",)),
    )(xs, h0_p, wx_cat, wgh, b_cat)

    ys = ys_padded[:, :, :hidden_size]
    return ys, ys[-1]


def minimal_rnn_cell_ref(params, x, h):
    """Pure-JAX reference mirroring the PyTorch forward exactly."""
    update = jnp.tanh(x @ params["W_hx"] + params["b_hx"])
    g = jax.nn.sigmoid(x @ params["W_g_x"] + h @ params["W_g_h"] + params["b_g"])
    h_new = (1.0 - g) * h + g * update
    return h_new, h_new


if __name__ == "__main__":
    B, INPUT_SIZE, HIDDEN_SIZE, SEQ = 8, 16, 32, 8

    key = jax.random.PRNGKey(0)
    k_param, k_x = jax.random.split(key)
    params = make_params(k_param, INPUT_SIZE, HIDDEN_SIZE)

    xs = jax.random.normal(k_x, (SEQ, B, INPUT_SIZE), jnp.float32)
    h0 = jnp.zeros((B, HIDDEN_SIZE), jnp.float32)      # default_state

    ys, h_last = jax.jit(minimal_rnn_forward)(params, xs, h0)
    ys = jax.block_until_ready(ys)
    h_last = jax.block_until_ready(h_last)

    # Reference: step the pure-JAX cell over the sequence.
    h_ref = h0
    ys_ref = []
    for s in range(SEQ):
        out_ref, h_ref = minimal_rnn_cell_ref(params, xs[s], h_ref)
        ys_ref.append(out_ref)
    ys_ref = jnp.stack(ys_ref)

    assert ys.shape == (SEQ, B, HIDDEN_SIZE)
    assert jnp.allclose(ys, ys_ref, atol=1e-4, rtol=1e-4), "mismatch vs reference"
    assert jnp.allclose(h_last, ys_ref[-1], atol=1e-4, rtol=1e-4), "final-state mismatch"
    print("KERNEL_OK")
</pallas_src>

<mosaic_0001>
module attributes {stable_mosaic.version = 11 : i64} {
  func.func @mrnn_seq_kernel(%arg0: i32, %arg1: memref<1x8x16xf32, #tpu.memory_space<vmem>>, %arg2: memref<8x128xf32, #tpu.memory_space<vmem>>, %arg3: memref<16x256xf32, #tpu.memory_space<vmem>>, %arg4: memref<128x128xf32, #tpu.memory_space<vmem>>, %arg5: memref<1x256xf32, #tpu.memory_space<vmem>>, %arg6: memref<1x8x128xf32, #tpu.memory_space<vmem>>, %arg7: memref<8x128xf32, #tpu.memory_space<vmem>>) attributes {dimension_semantics = [#tpu.dimension_semantics<arbitrary>], iteration_bounds = array<i64: 8>, scalar_prefetch = 0 : i64, scratch_operands = 1 : i64, tpu.core_type = #tpu.core_type<tc>, window_params = [{transform_indices = @transform_0, window_bounds = array<i64: 1, 8, 16>}, {pipeline_mode = #tpu.pipeline_mode<synchronous>, transform_indices = @transform_1, window_bounds = array<i64: 8, 128>}, {pipeline_mode = #tpu.pipeline_mode<synchronous>, transform_indices = @transform_2, window_bounds = array<i64: 16, 256>}, {pipeline_mode = #tpu.pipeline_mode<synchronous>, transform_indices = @transform_3, window_bounds = array<i64: 128, 128>}, {pipeline_mode = #tpu.pipeline_mode<synchronous>, transform_indices = @transform_4, window_bounds = array<i64: 1, 256>}, {transform_indices = @transform_5, window_bounds = array<i64: 1, 8, 128>}]} {
    %c0_i32 = arith.constant 0 : i32
    %0 = arith.cmpi eq, %arg0, %c0_i32 : i32
    %1 = arith.extui %0 : i1 to i32
    %c0_i32_0 = arith.constant 0 : i32
    %2 = arith.cmpi ne, %1, %c0_i32_0 : i32
    scf.if %2 {
      %c0_18 = arith.constant 0 : index
      %c0_19 = arith.constant 0 : index
      %29 = vector.load %arg2[%c0_18, %c0_19] : memref<8x128xf32, #tpu.memory_space<vmem>>, vector<8x128xf32>
      %c0_20 = arith.constant 0 : index
      %c0_21 = arith.constant 0 : index
      %30 = vector.load %arg7[%c0_20, %c0_21] : memref<8x128xf32, #tpu.memory_space<vmem>>, vector<8x128xf32>
      tpu.vector_store %arg7[%c0_20, %c0_21], %29 {strides = array<i32>} : memref<8x128xf32, #tpu.memory_space<vmem>>, vector<8x128xf32>,
    } else {
    }
    %c0 = arith.constant 0 : index
    %c0_1 = arith.constant 0 : index
    %c0_2 = arith.constant 0 : index
    %3 = vector.load %arg1[%c0, %c0_1, %c0_2] : memref<1x8x16xf32, #tpu.memory_space<vmem>>, vector<1x8x16xf32>
    %4 = vector.shape_cast %3 : vector<1x8x16xf32> to vector<8x16xf32>
    %c0_3 = arith.constant 0 : index
    %c0_4 = arith.constant 0 : index
    %5 = vector.load %arg7[%c0_3, %c0_4] : memref<8x128xf32, #tpu.memory_space<vmem>>, vector<8x128xf32>
    %c0_5 = arith.constant 0 : index
    %c0_6 = arith.constant 0 : index
    %6 = vector.load %arg3[%c0_5, %c0_6] : memref<16x256xf32, #tpu.memory_space<vmem>>, vector<16x256xf32>
    %cst = arith.constant dense<0.000000e+00> : vector<8x256xf32>
    %7 = tpu.matmul %4, %6, %cst {dimension_numbers = #tpu.dot_dimension_numbers<[1], [0], [0], [1], [0, 0, 1, 1], [], []>} : vector<8x16xf32>, vector<16x256xf32>, vector<8x256xf32> -> vector<8x256xf32>
    %c0_7 = arith.constant 0 : index
    %c0_8 = arith.constant 0 : index
    %8 = vector.load %arg5[%c0_7, %c0_8] : memref<1x256xf32, #tpu.memory_space<vmem>>, vector<1x256xf32>
    %9 = vector.broadcast %8 : vector<1x256xf32> to vector<8x256xf32>
    %10 = arith.addf %7, %9 : vector<8x256xf32>
    %11 = vector.extract_strided_slice %10 {offsets = [0, 0], sizes = [8, 128], strides = [1, 1]} : vector<8x256xf32> to vector<8x128xf32>
    %12 = math.tanh %11 : vector<8x128xf32>
    %13 = vector.extract_strided_slice %10 {offsets = [0, 128], sizes = [8, 128], strides = [1, 1]} : vector<8x256xf32> to vector<8x128xf32>
    %c0_9 = arith.constant 0 : index
    %c0_10 = arith.constant 0 : index
    %14 = vector.load %arg4[%c0_9, %c0_10] : memref<128x128xf32, #tpu.memory_space<vmem>>, vector<128x128xf32>
    %cst_11 = arith.constant dense<0.000000e+00> : vector<8x128xf32>
    %15 = tpu.matmul %5, %14, %cst_11 {dimension_numbers = #tpu.dot_dimension_numbers<[1], [0], [0], [1], [0, 0, 1, 1], [], []>} : vector<8x128xf32>, vector<128x128xf32>, vector<8x128xf32> -> vector<8x128xf32>
    %16 = arith.addf %13, %15 : vector<8x128xf32>
    %17 = arith.negf %16 : vector<8x128xf32>
    %18 = math.exp %17 : vector<8x128xf32>
    %cst_12 = arith.constant 1.000000e+00 : f32
    %19 = vector.broadcast %cst_12 : f32 to vector<8x128xf32>
    %20 = arith.addf %19, %18 : vector<8x128xf32>
    %21 = arith.divf %19, %20 : vector<8x128xf32>
    %22 = arith.subf %12, %5 : vector<8x128xf32>
    %23 = arith.mulf %21, %22 : vector<8x128xf32>
    %24 = arith.addf %5, %23 : vector<8x128xf32>
    %c0_13 = arith.constant 0 : index
    %c0_14 = arith.constant 0 : index
    %25 = vector.load %arg7[%c0_13, %c0_14] : memref<8x128xf32, #tpu.memory_space<vmem>>, vector<8x128xf32>
    tpu.vector_store %arg7[%c0_13, %c0_14], %24 {strides = array<i32>} : memref<8x128xf32, #tpu.memory_space<vmem>>, vector<8x128xf32>,
    %c0_15 = arith.constant 0 : index
    %c0_16 = arith.constant 0 : index
    %c0_17 = arith.constant 0 : index
    %26 = vector.load %arg6[%c0_15, %c0_16, %c0_17] : memref<1x8x128xf32, #tpu.memory_space<vmem>>, vector<1x8x128xf32>
    %27 = vector.shape_cast %26 : vector<1x8x128xf32> to vector<8x128xf32>
    %28 = vector.shape_cast %24 : vector<8x128xf32> to vector<1x8x128xf32>
    tpu.vector_store %arg6[%c0_15, %c0_16, %c0_17], %28 {strides = array<i32>} : memref<1x8x128xf32, #tpu.memory_space<vmem>>, vector<1x8x128xf32>,
    return
  }
  func.func @transform_0(%arg0: i32) -> (i32, i32, i32) {
    %c0_i32 = arith.constant 0 : i32
    %c0_i32_0 = arith.constant 0 : i32
    %c0_i32_1 = arith.constant 0 : i32
    return %arg0, %c0_i32, %c0_i32_0 : i32, i32, i32
  }
  func.func @transform_1(%arg0: i32) -> (i32, i32) {
    %c0_i32 = arith.constant 0 : i32
    %c0_i32_0 = arith.constant 0 : i32
    %c0_i32_1 = arith.constant 0 : i32
    return %c0_i32, %c0_i32_0 : i32, i32
  }
  func.func @transform_2(%arg0: i32) -> (i32, i32) {
    %c0_i32 = arith.constant 0 : i32
    %c0_i32_0 = arith.constant 0 : i32
    %c0_i32_1 = arith.constant 0 : i32
    return %c0_i32, %c0_i32_0 : i32, i32
  }
  func.func @transform_3(%arg0: i32) -> (i32, i32) {
    %c0_i32 = arith.constant 0 : i32
    %c0_i32_0 = arith.constant 0 : i32
    %c0_i32_1 = arith.constant 0 : i32
    return %c0_i32, %c0_i32_0 : i32, i32
  }
  func.func @transform_4(%arg0: i32) -> (i32, i32) {
    %c0_i32 = arith.constant 0 : i32
    %c0_i32_0 = arith.constant 0 : i32
    %c0_i32_1 = arith.constant 0 : i32
    return %c0_i32, %c0_i32_0 : i32, i32
  }
  func.func @transform_5(%arg0: i32) -> (i32, i32, i32) {
    %c0_i32 = arith.constant 0 : i32
    %c0_i32_0 = arith.constant 0 : i32
    %c0_i32_1 = arith.constant 0 : i32
    return %arg0, %c0_i32, %c0_i32_0 : i32, i32, i32
  }
}

</mosaic_0001>

<bundles_post_ra>
// kernel: minimal_rnn_forward.1
= control target key start
LH: loop header
LB: loop body
LE: loop exit
PB: predicated region body
PF: predicated region fallthrough
CT: control target
= control target key end

     0   :  { %s621_s18 = smov 0   ;;  %s710_s0 = inlined_call_operand.vmem [shape: f32[8,8,16], index: 0, kind: input, shape index: {}]   ;;  %s711_s1 = inlined_call_operand.vmem [shape: f32[8,128], index: 1, kind: input, shape index: {}]   ;;  %s712_s2 = inlined_call_operand.vmem [shape: f32[16,256], index: 2, kind: input, shape index: {}]   ;;  %s713_s3 = inlined_call_operand.vmem [shape: f32[128,128], index: 3, kind: input, shape index: {}]   ;;  %s714_s4 = inlined_call_operand.vmem [shape: f32[1,256], index: 4, kind: input, shape index: {}]   ;;  %s715_s5 = inlined_call_operand.vmem [shape: f32[8,8,128], index: 5, kind: output, shape index: {}]  }
   0x1 LB: > { %s471_s19 = sadd.s32 4294967295, %s586_s18   ;;  %p475_p0 = scmp.ge.s32.totalorder %s586_s18, 1  ;;  %s586_s18 = sphi %s621_s18, %s15_s18  }
   0x2   : > { %p186_p1 = scmp.lt.s32.totalorder %s586_s18, 9 }
   0x4   : > { %p187_p2 = pnand %p475_p0, %p186_p1 }
   0x5   : > { %p212_p3 = scmp.lt.s32.totalorder (!%p187_p2), %s471_s19, 7  ;;  %p478_p4 = scmp.ne.s32.totalorder (!%p187_p2), %s471_s19, 0 }
   0x6   : > { %190 = sbr.rel (%p187_p2) target bundleno = 300 (0x12c), region = 40 }
   0xd   : > { %s213_s20 = scalar_select %p212_p3, %s471_s19, 7 }
   0xe   : > { %223 = sbr.rel (%p478_p4) target bundleno = 21 (0x15), region = 44  ;;  %v224_v0 = vld [vmem:[%s711_s1] sm:$0xff] (!%p478_p4) }
   0xf   : > { %s476_s21 = sshll.u32 %s213_s20, 3  ;;  %225 = vst [vmem:[#allocation2] sm:$0xff] (!%p478_p4), %v224_v0 }
  0x10   : > { %s632_s24 = scalar_lea.vmem %s710_s0, %s476_s21  ;;  %s637_s27 = scalar_lea.vmem %s715_s5, %s476_s21 }
  0x15 PF: > { %v320_v1 = vld [vmem:[%s713_s3] sm:$0xff]  ;;  %v321_v2 = vld [vmem:[%s713_s3 + $0x8] sm:$0xff]  ;;  %v322_v3 = vld [vmem:[%s713_s3 + $0x10] sm:$0xff]  ;;  %v588_v4 = vmov 0.0|0.0   ;;  %v589_v7 = vmov 0.0   ;;  %vm590_vm0 = vmmov 0   ;;  %v234_v37 = vlaneseq }
  0x16   : > { %539 = vmatprep.subr.bf16.mxu1 %v588_v4  ;;  %v540_v5 = vpack.c.bf16 %v321_v2, %v320_v1  ;;  %v323_v6 = vld [vmem:[%s713_s3 + $0x18] sm:$0xff]  ;;  %312 = vmatprep.mubr.f32.mxu0 %v589_v7  ;;  %v324_v9 = vld [vmem:[%s713_s3 + $0x20] sm:$0xff]  ;;  %v325_v10 = vld [vmem:[%s713_s3 + $0x28] sm:$0xff]  ;;  %vm244_vm1 = vcmask 130048  }
  0x17   : > { %532 = vmatprep.mubr.msk.f32.mxu1 %vm590_vm0, %v589_v7  ;;  %v543_v8 = vpack.c.bf16 %v323_v6, %v322_v3  ;;  %v229_v11 = vld [vmem:[%s712_s2 + $0x8] sm:$0xff]  ;;  %v231_v12 = vld [vmem:[%s712_s2 + $0x18] sm:$0xff]  ;;  %v228_v13 = vld [vmem:[%s712_s2] sm:$0xff]  ;;  %v546_v17 = vpack.c.bf16 %v325_v10, %v324_v9  ;;  %v235_v38 = vshrl.u32 %v234_v37, 7 }
  0x18   : > { %541 = vmatpush3.bf16.msra.mxu1 %v540_v5  ;;  %v535_v14 = vpack.c.bf16 %v231_v12, %v229_v11  ;;  %v230_v15 = vld [vmem:[%s712_s2 + $0x10] sm:$0xff]  ;;  %v327_v19 = vld [vmem:[%s713_s3 + $0x38] sm:$0xff]  ;;  %v226_v20 = vld [vmem:[%s632_s24] sm:$0xff] }
  0x19   : > { %542 = vmatprep.subr.bf16.mxu1 %v588_v4  ;;  %v537_v16 = vpack.c.bf16 %v230_v15, %v228_v13  ;;  %v326_v18 = vld [vmem:[%s713_s3 + $0x30] sm:$0xff]  ;;  %v328_v22 = vld [vmem:[%s713_s3 + $0x40] sm:$0xff]  ;;  %v329_v23 = vld [vmem:[%s713_s3 + $0x48] sm:$0xff]  ;;  %v240_v39 = vsub.s32 1, %v235_v38  ;;  %v236_v46 = vsub.s32 0, %v235_v38 }
  0x1a   : > { %536 = vmatprep.subr.bf16.mxu0 %v535_v14  ;;  %v549_v21 = vpack.c.bf16 %v327_v19, %v326_v18  ;;  %v552_v24 = vpack.c.bf16 %v329_v23, %v328_v22  ;;  %v330_v25 = vld [vmem:[%s713_s3 + $0x50] sm:$0xff]  ;;  %v331_v26 = vld [vmem:[%s713_s3 + $0x58] sm:$0xff]  ;;  %v332_v28 = vld [vmem:[%s713_s3 + $0x60] sm:$0xff] }
  0x1b   : > { %538 = vmatpush1.bf16.msra.mxu0 %v537_v16  ;;  %v555_v27 = vpack.c.bf16 %v331_v26, %v330_v25  ;;  %v333_v29 = vld [vmem:[%s713_s3 + $0x68] sm:$0xff]  ;;  %v334_v31 = vld [vmem:[%s713_s3 + $0x70] sm:$0xff]  ;;  %v335_v32 = vld [vmem:[%s713_s3 + $0x78] sm:$0xff] }
  0x1c   : > { %544 = vmatpush3.bf16.msra.mxu1 %v543_v8  ;;  %v558_v30 = vpack.c.bf16 %v333_v29, %v332_v28  ;;  %v561_v33 = vpack.c.bf16 %v335_v32, %v334_v31  ;;  %v227_v34 = vld [vmem:[#allocation2] sm:$0xff] }
  0x1d   : > { %545 = vmatprep.subr.bf16.mxu1 %v588_v4  ;;  %v232_v40 = vld [vmem:[%s714_s4] sm:$0x3] }
  0x1e   : > { %479 = vmatmul.mubr.msk.f32.vlgmr.msra.gmra.mrb[0].mxu0 %vm244_vm1, %v226_v20  ;;  %v241_v41 = vrot.slane %v232_v40, %v240_v39  ;;  %v237_v48 = vrot.slane %v232_v40, %v236_v46 }
  0x20   : > { %547 = vmatpush3.bf16.msra.mxu1 %v546_v17 }
  0x21   : > { %548 = vmatprep.subr.bf16.mxu1 %v588_v4 }
  0x24   : > { %550 = vmatpush3.bf16.msra.mxu1 %v549_v21 }
  0x25   : > { %551 = vmatprep.subr.bf16.mxu1 %v588_v4 }
  0x28   : > { %553 = vmatpush3.bf16.msra.mxu1 %v552_v24 }
  0x29   : > { %554 = vmatprep.subr.bf16.mxu1 %v588_v4 }
  0x2c   : > { %556 = vmatpush3.bf16.msra.mxu1 %v555_v27 }
  0x2d   : > { %557 = vmatprep.subr.bf16.mxu1 %v588_v4 }
  0x30   : > { %559 = vmatpush3.bf16.msra.mxu1 %v558_v30 }
  0x31   : > { %560 = vmatprep.subr.bf16.mxu1 %v588_v4 }
  0x34   : > { %562 = vmatpush3.bf16.msra.mxu1 %v561_v33 }
  0x37   : > { %533 = vmatmul.mubr.f32.vlgmr.msra.gmra.mrb[0].mxu1 %v227_v34 }
  0xf1   : > { %v314_v35 = vpop.f32.mrb[0].mxu0 }
  0xf2   : > { %v316_v36 = vpop.f32.mrb[1].mxu0  ;;  %v315_v49 = vadd.f32 %v314_v35, %v237_v48 }
  0xf3   : > { %v317_v42 = vadd.f32 %v316_v36, %v241_v41 }
 0x10a   : > { %v402_v43 = vpop.f32.mrb[0].mxu1 }
 0x10b   : > { %v406_v44 = vadd.f32 %v402_v43, %v317_v42  ;;  %v534_v45 = vpop.f32.mrb[1].mxu1 }
 0x10d   : > { %v480_v47 = vmul.f32 -1.442695, %v406_v44 }
 0x10f   : > { %574 = vpow2.f32 %v480_v47 }
 0x110   : > { %576 = vtanh.f32 %v315_v49 }
 0x119   : > { %v575_v50 = vpop.eup %574 }
 0x11a   : > { %v410_v51 = vadd.f32 1.0, %v575_v50  ;;  %v577_v52 = vpop.eup %576 }
 0x11b   : > { %v413_v53 = vsub.f32 %v577_v52, %v227_v34 }
 0x11c   : > { %578 = vrcp.f32 %v410_v51 }
 0x126   : > { %v579_v54 = vpop.eup %578 }
 0x127   : > { %v414_v55 = vmul.f32 %v579_v54, %v413_v53 }
 0x129   : > { %v415_v56 = vadd.f32 %v414_v55, %v227_v34 }
 0x12b   : > { %416 = vst [vmem:[#allocation2] sm:$0xff] %v415_v56  ;;  %417 = vst [vmem:[%s637_s27] sm:$0xff] %v415_v56 }
 0x12c PF: > { %s15_s18 = sadd.s32 1, %s586_s18  }
 0x12d   : > { %p12_p5 = scmp.ge.s32.totalorder %s15_s18, 10  }
 0x12f   :  { %14 = sbr.rel (!%p12_p5) target bundleno = 1 (0x1), region = 74 }

</bundles_post_ra>
